<compile_context>
chip_gen: v5e
topology: v5e:2x2
jax: 0.10.0
libtpu: 0.0.40
codegen_flags: <defaults>
</compile_context>

<pallas_src>
import functools
import math

import jax
import jax.numpy as jnp
from jax import lax
from jax.experimental import pallas as pl
from jax.experimental.pallas import tpu as pltpu

_EPS = 1e-12                          # torch.nn.functional.normalize default eps
_TILE_BYTES = 2 * 1024 * 1024         # per-tile cap; in+out double-buffered ~8 MiB
_VMEM_LIMIT_BYTES = 32 * 1024 * 1024  # >= v5e default (16 MiB), == v6e/v7x default
_MIN_GRID_STEPS = 16                  # >= 8 steps per TensorCore under megacore


def _cdiv(a: int, b: int) -> int:
    return -(-a // b)


def _round_up(x: int, m: int) -> int:
    return _cdiv(x, m) * m


def _round_down(x: int, m: int) -> int:
    return (x // m) * m


def _refined_recip(denom):
    # EUP approximate reciprocal (free slot under a mem-bound roofline) plus
    # one Newton step to recover ~f32 accuracy.
    r = pl.reciprocal(denom, approx=True)
    return r * (2.0 - denom * r)


# ----------------------------------------------------------------------------
# Kernels
# ----------------------------------------------------------------------------
def _l1_kernel_direct(x_ref, o_ref):
    """One block holds full rows: out = x / max(sum(|x|, -1), eps)."""
    x = x_ref[...].astype(jnp.float32)
    denom = jnp.maximum(jnp.sum(jnp.abs(x), axis=-1, keepdims=True), _EPS)
    o_ref[...] = (x * _refined_recip(denom)).astype(o_ref.dtype)


def _l1_kernel_packed(x_ref, gather_ref, scatter_ref, o_ref):
    """Lane-dense path for small D: each slab of `width = groups*d` lanes packs
    `groups` logical rows.  Segmented sums / broadcast via tiny constant 0/1
    matmuls on the MXU (matrices are hoisted to resident inputs)."""
    x = x_ref[...].astype(jnp.float32)
    sums = jnp.dot(jnp.abs(x), gather_ref[...],
                   preferred_element_type=jnp.float32)          # (tr, groups)
    recip = _refined_recip(jnp.maximum(sums, _EPS))
    scale = jnp.dot(recip, scatter_ref[...],
                    preferred_element_type=jnp.float32)         # (tr, width)
    o_ref[...] = (x * scale).astype(o_ref.dtype)


def _l1_kernel_chunked(x_ref, o_ref, sums_ref, *, d, tile_d):
    """Fused two-pass path for very wide D.  Grid = (rows, 2, d_chunks):
    pass 0 accumulates per-row |x| sums in VMEM scratch, pass 1 scales."""
    p = pl.program_id(1)
    k = pl.program_id(2)

    @pl.when(p == 0)
    def _():
        @pl.when(k == 0)
        def _():
            sums_ref[...] = jnp.zeros_like(sums_ref)
        ax = jnp.abs(x_ref[...].astype(jnp.float32))
        if d % tile_d != 0:
            # Mask garbage lanes in the partial last chunk (no wrapper padding).
            lane = lax.broadcasted_iota(jnp.int32, ax.shape, 1)
            ax = jnp.where(k * tile_d + lane < d, ax, 0.0)
        sums_ref[...] += jnp.sum(ax, axis=-1, keepdims=True)

    @pl.when((p == 1) & (k == 0))
    def _():
        # Convert accumulated sums into per-row reciprocals once per row tile.
        sums_ref[...] = _refined_recip(jnp.maximum(sums_ref[...], _EPS))

    @pl.when(p == 1)
    def _():
        o_ref[...] = (x_ref[...].astype(jnp.float32) * sums_ref[...]).astype(o_ref.dtype)


# ----------------------------------------------------------------------------
# Wrapper
# ----------------------------------------------------------------------------
def normalize_scale_controller(x: jax.Array, dim: int = 0, p: int = 1,
                               *, _force_tile_bytes: int | None = None) -> jax.Array:
    """Pallas equivalent of NormalizeScaleController.forward.

    NOTE: the reference module ignores `dim` and `p` and always does
    F.normalize(x, p=1, dim=-1); we reproduce that exactly.
    """
    orig_shape = x.shape
    orig_dtype = x.dtype
    d = int(orig_shape[-1])
    rows = int(math.prod(orig_shape[:-1])) if len(orig_shape) > 1 else 1
    x2 = x.reshape(rows, d)

    itemsize = jnp.dtype(orig_dtype).itemsize
    sub = max(8, 32 // max(1, itemsize))          # dtype-aware sublane multiple
    tile_cap = _force_tile_bytes if _force_tile_bytes is not None else _TILE_BYTES

    # Lane-dense packing for small last dims.
    groups, width = 1, d
    if d < 128:
        lcm = d * 128 // math.gcd(d, 128)
        if lcm <= 512:
            groups, width = lcm // d, lcm

    compiler_params = pltpu.CompilerParams(
        dimension_semantics=("parallel",),
        vmem_limit_bytes=_VMEM_LIMIT_BYTES,
    )

    # ---------------- streaming path: full rows fit one block ---------------
    if sub * width * itemsize <= tile_cap:
        if groups > 1:
            if rows % groups:
                # Minimal pad so the lane-packing reshape is legal; the padded
                # zero rows normalize to 0/eps = 0 and are sliced off after.
                x2 = jnp.pad(x2, ((0, groups - rows % groups), (0, 0)))
            packed_rows = x2.shape[0] // groups
            xin = x2.reshape(packed_rows, width)   # contiguous reshape: free
        else:
            packed_rows = rows
            xin = x2

        max_rows_budget = max(sub, _round_down(tile_cap // (width * itemsize), sub))
        target_rows = max(sub, _round_up(_cdiv(packed_rows, _MIN_GRID_STEPS), sub))
        tile_rows = min(max_rows_budget, target_rows)
        grid = (_cdiv(packed_rows, tile_rows),)   # partial last block: masked by Pallas

        x_spec = pl.BlockSpec((tile_rows, width), lambda i: (i, 0))
        out_spec = pl.BlockSpec((tile_rows, width), lambda i: (i, 0))
        cost = pl.CostEstimate(flops=4 * rows * d, transcendentals=rows,
                               bytes_accessed=2 * rows * d * itemsize)

        if groups == 1:
            out = pl.pallas_call(
                _l1_kernel_direct,
                out_shape=jax.ShapeDtypeStruct(xin.shape, orig_dtype),
                grid_spec=pltpu.PrefetchScalarGridSpec(
                    num_scalar_prefetch=0, grid=grid,
                    in_specs=[x_spec], out_specs=out_spec),
                compiler_params=compiler_params,
                cost_estimate=cost,
            )(xin)
            return out.reshape(orig_shape)

        # Hoisted constant 0/1 matrices: segmented sum (gather) and per-segment
        # broadcast (scatter) via the MXU.  Resident (index_map -> (0, 0)).
        seg = jnp.arange(width, dtype=jnp.int32) // d
        gids = jnp.arange(groups, dtype=jnp.int32)
        gather = (seg[:, None] == gids[None, :]).astype(jnp.float32)   # (width, groups)
        scatter = jnp.transpose(gather)                                # (groups, width)

        out = pl.pallas_call(
            _l1_kernel_packed,
            out_shape=jax.ShapeDtypeStruct(xin.shape, orig_dtype),
            grid_spec=pltpu.PrefetchScalarGridSpec(
                num_scalar_prefetch=0, grid=grid,
                in_specs=[x_spec,
                          pl.BlockSpec((width, groups), lambda i: (0, 0)),
                          pl.BlockSpec((groups, width), lambda i: (0, 0))],
                out_specs=out_spec),
            compiler_params=compiler_params,
            cost_estimate=cost,
        )(xin, gather, scatter)

        out = out.reshape(packed_rows * groups, d)
        if packed_rows * groups != rows:
            out = out[:rows]
        return out.reshape(orig_shape)

    # ---------------- fused chunked path: very wide last dim ----------------
    tile_rows = min(256, _round_up(rows, sub))
    max_tile_d = max(128, _round_down(tile_cap // (tile_rows * itemsize), 128))
    tile_d = _round_up(_cdiv(d, _cdiv(d, max_tile_d)), 128)
    grid = (_cdiv(rows, tile_rows), 2, _cdiv(d, tile_d))

    kernel = functools.partial(_l1_kernel_chunked, d=d, tile_d=tile_d)
    out = pl.pallas_call(
        kernel,
        out_shape=jax.ShapeDtypeStruct((rows, d), orig_dtype),
        grid_spec=pltpu.PrefetchScalarGridSpec(
            num_scalar_prefetch=0, grid=grid,
            in_specs=[pl.BlockSpec((tile_rows, tile_d), lambda i, s, k: (i, k))],
            # Pass 0 parks the output on block (i, 0); it is written at
            # (pass=1, k=0) before its first flush, so every output block is
            # flushed exactly once with valid data.
            out_specs=pl.BlockSpec((tile_rows, tile_d), lambda i, s, k: (i, s * k)),
            scratch_shapes=[pltpu.VMEM((tile_rows, 1), jnp.float32)]),
        compiler_params=pltpu.CompilerParams(
            dimension_semantics=("parallel", "arbitrary", "arbitrary"),
            vmem_limit_bytes=_VMEM_LIMIT_BYTES),
        cost_estimate=pl.CostEstimate(
            flops=3 * rows * d, transcendentals=rows,
            bytes_accessed=3 * rows * d * itemsize),
    )(x2)
    return out.reshape(orig_shape)


# ----------------------------------------------------------------------------
# Reference + self-test
# ----------------------------------------------------------------------------
def _reference(x: jax.Array) -> jax.Array:
    xf = x.astype(jnp.float32)
    denom = jnp.maximum(jnp.sum(jnp.abs(xf), axis=-1, keepdims=True), _EPS)
    return (xf / denom).astype(x.dtype)


if __name__ == "__main__":
    key = jax.random.PRNGKey(0)
    k1, k2, k3, k4, k5 = jax.random.split(key, 5)

    # 1) NCHW-like demo shape (D=16 -> lane-dense packed path, groups=8).
    x1 = jax.random.normal(k1, (2, 4, 16, 16), dtype=jnp.float32)
    out1 = jax.block_until_ready(normalize_scale_controller(x1))
    assert out1.shape == x1.shape and out1.dtype == x1.dtype
    assert jnp.allclose(out1, _reference(x1), atol=1e-5, rtol=1e-5), "packed path mismatch"
    assert jnp.allclose(jnp.sum(jnp.abs(out1), axis=-1), 1.0, atol=1e-5)

    # 2) Direct path, rows not a tile multiple -> partial last block, no pad.
    x2 = jax.random.normal(k2, (3, 5, 40), dtype=jnp.float32)
    out2 = jax.block_until_ready(normalize_scale_controller(x2))
    assert jnp.allclose(out2, _reference(x2), atol=1e-5, rtol=1e-5), "partial-block mismatch"

    # 3) Direct path, D >= 128.
    x3 = jax.random.normal(k3, (3, 8, 256), dtype=jnp.float32)
    out3 = jax.block_until_ready(normalize_scale_controller(x3))
    assert jnp.allclose(out3, _reference(x3), atol=1e-5, rtol=1e-5), "direct path mismatch"

    # 4) bf16 packed path with ragged rows (minimal groups-pad, sub=16 sublanes).
    x4 = jax.random.normal(k4, (6, 16), dtype=jnp.bfloat16)
    out4 = jax.block_until_ready(normalize_scale_controller(x4))
    assert out4.dtype == x4.dtype
    assert jnp.allclose(out4.astype(jnp.float32), _reference(x4).astype(jnp.float32),
                        atol=1e-2, rtol=1e-2), "bf16 packed path mismatch"

    # 5) Fused chunked wide-D path (forced via a tiny tile budget so it runs
    #    at a small test shape; exercises the masked partial last chunk).
    x5 = jax.random.normal(k5, (20, 700), dtype=jnp.float32)
    out5 = jax.block_until_ready(
        normalize_scale_controller(x5, _force_tile_bytes=16 * 1024))
    assert jnp.allclose(out5, _reference(x5), atol=1e-5, rtol=1e-5), "chunked path mismatch"

    print("KERNEL_OK")
</pallas_src>

<mosaic_0001>
module attributes {stable_mosaic.version = 11 : i64} {
  func.func @_l1_kernel_packed(%arg0: i32, %arg1: memref<8x128xf32, #tpu.memory_space<vmem>>, %arg2: memref<128x8xf32, #tpu.memory_space<vmem>>, %arg3: memref<8x128xf32, #tpu.memory_space<vmem>>, %arg4: memref<8x128xf32, #tpu.memory_space<vmem>>) attributes {dimension_semantics = [#tpu.dimension_semantics<parallel>], iteration_bounds = array<i64: 2>, scalar_prefetch = 0 : i64, scratch_operands = 0 : i64, tpu.core_type = #tpu.core_type<tc>, window_params = [{transform_indices = @transform_0, window_bounds = array<i64: 8, 128>}, {pipeline_mode = #tpu.pipeline_mode<synchronous>, transform_indices = @transform_1, window_bounds = array<i64: 128, 8>}, {pipeline_mode = #tpu.pipeline_mode<synchronous>, transform_indices = @transform_2, window_bounds = array<i64: 8, 128>}, {transform_indices = @transform_3, window_bounds = array<i64: 8, 128>}]} {
    %c0 = arith.constant 0 : index
    %c0_0 = arith.constant 0 : index
    %0 = vector.load %arg1[%c0, %c0_0] : memref<8x128xf32, #tpu.memory_space<vmem>>, vector<8x128xf32>
    %1 = math.absf %0 : vector<8x128xf32>
    %c0_1 = arith.constant 0 : index
    %c0_2 = arith.constant 0 : index
    %2 = vector.load %arg2[%c0_1, %c0_2] : memref<128x8xf32, #tpu.memory_space<vmem>>, vector<128x8xf32>
    %cst = arith.constant dense<0.000000e+00> : vector<8x8xf32>
    %3 = tpu.matmul %1, %2, %cst {dimension_numbers = #tpu.dot_dimension_numbers<[1], [0], [0], [1], [0, 0, 1, 1], [], []>} : vector<8x128xf32>, vector<128x8xf32>, vector<8x8xf32> -> vector<8x8xf32>
    %cst_3 = arith.constant 9.99999996E-13 : f32
    %4 = vector.broadcast %cst_3 : f32 to vector<8x8xf32>
    %5 = arith.maximumf %3, %4 : vector<8x8xf32>
    %6 = tpu.reciprocal %5 {approx = true} : vector<8x8xf32> -> vector<8x8xf32>
    %7 = arith.mulf %5, %6 : vector<8x8xf32>
    %cst_4 = arith.constant 2.000000e+00 : f32
    %8 = vector.broadcast %cst_4 : f32 to vector<8x8xf32>
    %9 = arith.subf %8, %7 : vector<8x8xf32>
    %10 = arith.mulf %6, %9 : vector<8x8xf32>
    %c0_5 = arith.constant 0 : index
    %c0_6 = arith.constant 0 : index
    %11 = vector.load %arg3[%c0_5, %c0_6] : memref<8x128xf32, #tpu.memory_space<vmem>>, vector<8x128xf32>
    %cst_7 = arith.constant dense<0.000000e+00> : vector<8x128xf32>
    %12 = tpu.matmul %10, %11, %cst_7 {dimension_numbers = #tpu.dot_dimension_numbers<[1], [0], [0], [1], [0, 0, 1, 1], [], []>} : vector<8x8xf32>, vector<8x128xf32>, vector<8x128xf32> -> vector<8x128xf32>
    %13 = arith.mulf %0, %12 : vector<8x128xf32>
    %c0_8 = arith.constant 0 : index
    %c0_9 = arith.constant 0 : index
    %14 = vector.load %arg4[%c0_8, %c0_9] : memref<8x128xf32, #tpu.memory_space<vmem>>, vector<8x128xf32>
    tpu.vector_store %arg4[%c0_8, %c0_9], %13 {strides = array<i32>} : memref<8x128xf32, #tpu.memory_space<vmem>>, vector<8x128xf32>,
    return
  }
  func.func @transform_0(%arg0: i32) -> (i32, i32) {
    %c0_i32 = arith.constant 0 : i32
    %c0_i32_0 = arith.constant 0 : i32
    return %arg0, %c0_i32 : i32, i32
  }
  func.func @transform_1(%arg0: i32) -> (i32, i32) {
    %c0_i32 = arith.constant 0 : i32
    %c0_i32_0 = arith.constant 0 : i32
    %c0_i32_1 = arith.constant 0 : i32
    return %c0_i32, %c0_i32_0 : i32, i32
  }
  func.func @transform_2(%arg0: i32) -> (i32, i32) {
    %c0_i32 = arith.constant 0 : i32
    %c0_i32_0 = arith.constant 0 : i32
    %c0_i32_1 = arith.constant 0 : i32
    return %c0_i32, %c0_i32_0 : i32, i32
  }
  func.func @transform_3(%arg0: i32) -> (i32, i32) {
    %c0_i32 = arith.constant 0 : i32
    %c0_i32_0 = arith.constant 0 : i32
    return %arg0, %c0_i32 : i32, i32
  }
}

</mosaic_0001>

<bundles_post_ra>
// kernel: tpu_custom_call.1
= control target key start
LH: loop header
LB: loop body
LE: loop exit
PB: predicated region body
PF: predicated region fallthrough
CT: control target
= control target key end

     0   :  { %8 = vsyncpa [#allocation3], 0  ;;  %s583_s0 = inlined_call_operand.vmem [shape: f32[16,128], index: 0, kind: input, shape index: {}]   ;;  %s584_s1 = inlined_call_operand.vmem [shape: f32[128,8], index: 1, kind: input, shape index: {}]   ;;  %s585_s2 = inlined_call_operand.vmem [shape: f32[8,128], index: 2, kind: input, shape index: {}]   ;;  %s586_s3 = inlined_call_operand.hbm [shape: f32[16,128], index: 3, kind: output, shape index: {}]  }
   0x1   :  { %10 = vsyncpa [#allocation3 + $0x1], 0  ;;  %s447_s12 = smov 0   ;;  %s449_s13 = smov 0  }
   0x2   :  { %s451_s14 = smov 0   ;;  %s453_s15 = smov 0  }
   0x3 LB: > { %s468_s16 = sadd.s32 4294967295, %s425_s15   ;;  %s311_s17 = sadd.s32 4294967294, %s425_s15   ;;  %s425_s15 = sphi %s453_s15, %s592_s15   ;;  %s421_s14 = sphi %s451_s14, %s591_s14   ;;  %s417_s13 = sphi %s449_s13, %s590_s13   ;;  %s413_s12 = sphi %s447_s12, %s589_s12  }
   0x4   : > { %s472_s18 = sadd.s32 1, %s425_s15   ;;  %s91_s19 = sadd.s32 1, %s421_s14 }
   0x5   : > { %s88_s20 = ssub.s32 %s425_s15, %s472_s18  ;;  %p101_p0 = scmp.ne.s32.totalorder %s421_s14, %s417_s13 }
   0x6   : > { %p89_p1 = scmp.eq.s32.totalorder %s88_s20, 0  ;;  %p102_p2 = scmp.eq.s32.totalorder %s468_s16, 1 }
   0x7   : > { %p107_p3 = scmp.ne.s32.totalorder %s417_s13, %s413_s12  ;;  %p108_p4 = scmp.eq.s32.totalorder %s311_s17, 1 }
   0x8   : > { %s483_s21 = scalar_select %p89_p1, %s421_s14, %s91_s19  }
   0x9   : > { %p485_p5 = por %p102_p2, %p101_p0  ;;  %p489_p6 = por %p108_p4, %p107_p3 }
   0xa   : > { %p314_p7 = scmp.ge.s32.totalorder %s425_s15, 1  ;;  %p139_p8 = scmp.lt.s32.totalorder %s425_s15, 3 }
   0xc   : > { %p140_p9 = pnand %p314_p7, %p139_p8 }
   0xd   : > { %p162_p10 = scmp.lt.s32.totalorder (!%p140_p9), %s468_s16, 1  ;;  %s159_s27 = sand.u32 (!%p140_p9), 1, %s417_s13  }
   0xe   : > { %143 = sbr.rel (%p140_p9) target bundleno = 323 (0x143), region = 32  ;;  %s315_s28 = sshll.u32 (!%p140_p9), %s159_s27, 3 }
   0xf   : > { %s161_s6 = scalar_lea.vmem (!%p140_p9), [#allocation2], %s315_s28  ;;  %s383_s19 = scalar_lea.hbm (!%p140_p9), %s586_s3, 16 }
  0x10   : > { %s249_s7 = sshll.u32 (!%p140_p9), %s161_s6, 4  ;;  %s250_s7 = int_to_ptr.vmem [resolvable:$true] %s249_s7 }
  0x13   : > { %v183_v0 = vld [vmem:[%s584_s1 + $0x78] sm:$0xff]  ;;  %v182_v1 = vld [vmem:[%s584_s1 + $0x70] sm:$0xff]  ;;  %v181_v2 = vld [vmem:[%s584_s1 + $0x68] sm:$0xff]  ;;  %s163_s24 = scalar_select %p162_p10, %s468_s16, 1  ;;  %vm210_vm0 = vcmask 64512  }
  0x14   : > { %184 = vmatpush.msra.mxu0 %v183_v0  ;;  %v180_v3 = vld [vmem:[%s584_s1 + $0x60] sm:$0xff]  ;;  %v179_v4 = vld [vmem:[%s584_s1 + $0x58] sm:$0xff]  ;;  %v178_v5 = vld [vmem:[%s584_s1 + $0x50] sm:$0xff] }
  0x15   : > { %v177_v6 = vld [vmem:[%s584_s1 + $0x48] sm:$0xff]  ;;  %v176_v7 = vld [vmem:[%s584_s1 + $0x40] sm:$0xff]  ;;  %v175_v8 = vld [vmem:[%s584_s1 + $0x38] sm:$0xff]  ;;  %s316_s29 = sshll.u32 %s163_s24, 3 }
  0x16   : > { %185 = vmatpush.msra.mxu0 %v182_v1  ;;  %v174_v9 = vld [vmem:[%s584_s1 + $0x30] sm:$0xff]  ;;  %v173_v10 = vld [vmem:[%s584_s1 + $0x28] sm:$0xff]  ;;  %v172_v11 = vld [vmem:[%s584_s1 + $0x20] sm:$0xff]  ;;  %s165_s9 = scalar_lea.vmem %s583_s0, %s316_s29  ;;  %s319_s29 = sshll.u32 %s468_s16, 3 }
  0x17   : > { %v171_v12 = vld [vmem:[%s584_s1 + $0x18] sm:$0xff]  ;;  %v170_v13 = vld [vmem:[%s584_s1 + $0x10] sm:$0xff]  ;;  %v166_v14 = vld [vmem:[%s165_s9] sm:$0xff]  ;;  %s247_s5 = scalar_lea.hbm %s586_s3, %s319_s29  ;;  %s237_s9 = scalar_lea.sflag [#allocation3], %s159_s27 }
  0x18   : > { %186 = vmatpush.msra.mxu0 %v181_v2  ;;  %v169_v15 = vld [vmem:[%s584_s1 + $0x8] sm:$0xff]  ;;  %v168_v16 = vld [vmem:[%s584_s1] sm:$0xff]  ;;  %v167_v17 = vand.u32 2147483647, %v166_v14  ;;  %s251_s8 = sshll.u32 %s247_s5, 4  ;;  %s252_s8 = int_to_ptr.hbm [resolvable:$true] %s251_s8 }
  0x19   : > { %v209_v18 = vld [vmem:[%s585_s2] sm:$0xff]  ;;  %s377_s10 = sshra.s32 %s252_s8, 4  ;;  %s378_s10 = int_to_ptr.hbm [resolvable:$true] %s377_s10 }
  0x1a   : > { %187 = vmatpush.msra.mxu0 %v180_v3  ;;  %229 = vmatpush.msra.mxu1 %v209_v18  ;;  %s379_s11 = scalar_lea.hbm %s378_s10, 8  ;;  %p384_p0 = scmp.lt.s32.totalorder %s378_s10, %s586_s3 }
  0x1b   : > { %p380_p11 = scmp.ne.s32.totalorder %s378_s10, %s379_s11  ;;  %p385_p1 = scmp.lt.s32.totalorder %s383_s19, %s379_s11 }
  0x1c   : > { %188 = vmatpush.msra.mxu0 %v179_v4 }
  0x1d   : > { %p381_p12 = pnand %p380_p11, %p485_p5  ;;  %p386_p2 = por %p385_p1, %p384_p0 }
  0x1e   : > { %189 = vmatpush.msra.mxu0 %v178_v5 }
  0x1f   : > { %p382_p13 = pneg %p381_p12 }
  0x20   : > { %190 = vmatpush.msra.mxu0 %v177_v6 }
  0x21   : > { %p387_p3 = pnand %p386_p2, %p382_p13 }
  0x22   : > { %191 = vmatpush.msra.mxu0 %v176_v7 }
  0x24   : > { %192 = vmatpush.msra.mxu0 %v175_v8 }
  0x26   : > { %193 = vmatpush.msra.mxu0 %v174_v9 }
  0x28   : > { %194 = vmatpush.msra.mxu0 %v173_v10 }
  0x2a   : > { %195 = vmatpush.msra.mxu0 %v172_v11 }
  0x2c   : > { %196 = vmatpush.msra.mxu0 %v171_v12 }
  0x2e   : > { %197 = vmatpush.msra.mxu0 %v170_v13 }
  0x30   : > { %198 = vmatpush.msra.mxu0 %v169_v15 }
  0x32   : > { %199 = vmatpush.msra.mxu0 %v168_v16 }
  0x33   : > { %200 = vmatmul.f32.vlgmr.msra.gmra.mxu0 %v167_v17 }
  0xb0   : > { %v201_v19 = vpop.f32.mrf.mxu0 }
  0xb1   : > { %v204_v20 = vmax.f32 %v201_v19, 1e-12 }
  0xb3   : > { %361 = vrcp.f32 %v204_v20 }
  0xb9   : > { %v362_v21 = vpop.eup %361 }
  0xba   : > { %v206_v22 = vmul.f32 %v362_v21, %v204_v20 }
  0xbc   : > { %v207_v23 = vsub.f32 2.0, %v206_v22 }
  0xbe   : > { %v208_v24 = vmul.f32 %v362_v21, %v207_v23 }
  0xc0   : > { %317 = vmatmul.msk.f32.vlgmr.msra.gmra.mxu1 %vm210_vm0, %v208_v24 }
 0x13d   : > { %v231_v25 = vpop.f32.mrf.mxu1 }
 0x13e   : > { %v234_v26 = vmul.f32 %v231_v25, %v166_v14 }
 0x140   : > { %235 = vst [vmem:[%s161_s6] sm:$0xff] %v234_v26 }
 0x141   : > { %390 = shalt.err (!%p387_p3)
}
 0x142   : > { %322 = dma.vmem_to_hbm [thread:$0]  (%p485_p5), %s250_s7, 128, %s252_s8, %s237_s9  }
 0x143 PF: > { %p328_p4 = scmp.ge.s32.totalorder %s425_s15, 2  ;;  %s263_s25 = sand.u32 1, %s413_s12  }
 0x144   : > { %s264_s26 = scalar_lea.sflag [#allocation3], %s263_s25 }
 0x145   : > { %p325_p7 = pnand %p328_p4, %p489_p6 }
 0x147   : > { %p326_p8 = pneg %p325_p7 }
 0x149   : > { %408 = dma.done.wait (%p326_p8), %s264_s26, 128  }
 0x14a   : > { %410 = vsyncadd (%p326_p8), %s264_s26, 4294967168  ;;  %p13_p9 = scmp.ge.s32.totalorder %s472_s18, 4   ;;  %s589_s12 = smov %s417_s13 }
 0x14b   : > { %s590_s13 = smov %s421_s14  ;;  %s591_s14 = smov %s483_s21 }
 0x14c   : > { %s592_s15 = smov %s472_s18  ;;  %15 = sbr.rel (!%p13_p9) target bundleno = 3 (0x3), region = 67 }
 0x151   :  { %270 = vsyncpa [#allocation3], 1 }
 0x152   :  { %272 = vsyncpa [#allocation3 + $0x1], 1 }

</bundles_post_ra>
